<compile_context>
chip_gen: v5e
topology: v5e:2x2
jax: 0.10.0
libtpu: 0.0.40
codegen_flags: <defaults>
</compile_context>

<pallas_src>
import jax
import jax.numpy as jnp
from jax import lax
from jax.experimental import pallas as pl
from jax.experimental.pallas import tpu as pltpu


# ---------------- Pallas kernels ----------------

def _cov_kernel(s_cm_ref, s_mc_ref, cov_ref):
    """Per-class covariance.

    s_cm_ref: (1, C, M)  support of class j, channels on sublanes
    s_mc_ref: (1, M, C)  same data, channels on lanes (native RHS layout)
    cov_ref:  (1, C, C)  f32 covariance
    """
    x_cm = s_cm_ref[0].astype(jnp.float32)            # (C, M)
    x_mc = s_mc_ref[0].astype(jnp.float32)            # (M, C)
    m = x_cm.shape[1]

    mean_c = jnp.mean(x_cm, axis=1, keepdims=True)    # (C, 1) lane reduce
    mean_r = jnp.mean(x_mc, axis=0, keepdims=True)    # (1, C) sublane reduce

    # Center both copies; feed the MXU in the input's native dtype (no-op for
    # f32, bf16 passes with f32 accumulation for bf16 inputs).
    xc_cm = (x_cm - mean_c).astype(s_cm_ref.dtype)
    xc_mc = (x_mc - mean_r).astype(s_mc_ref.dtype)

    # Native MXU orientation: LHS contracts on lanes, RHS contracts on
    # sublanes -- no hidden XLU transpose of either operand.
    cov = lax.dot_general(
        xc_cm, xc_mc,
        dimension_numbers=(((1,), (0,)), ((), ())),
        preferred_element_type=jnp.float32)           # (C, C) f32
    cov_ref[0] = cov * (1.0 / float(m - 1))


def _sim_kernel(cov_ref, qn_ref, o_ref):
    """Similarity for one lane-dense query tile against all classes.

    cov_ref: (N, C, C) f32, resident (tiny)
    qn_ref:  (C, TQ)   f32, normalized query tile (TQ is a multiple of 128)
    o_ref:   (N, TQ)   f32, output rows for this tile
    """
    qn = qn_ref[...]                                  # (C, TQ) f32, no cast
    n = cov_ref.shape[0]
    for j in range(n):                                # N is small & static
        cq = jnp.dot(cov_ref[j], qn,
                     preferred_element_type=jnp.float32)        # (C, TQ)
        # diag(q^T Cov q) per column == sum_c qn[c, p] * cq[c, p]
        o_ref[pl.ds(j, 1), :] = jnp.sum(qn * cq, axis=0, keepdims=True)


# ---------------- Wrapper ----------------

def cova_block(x1, x2_list, *, tq=2048):
    """Pallas implementation of CovaBlock.forward(x1, x2).

    x1: (Bq, C, H, W) queries; x2_list: list of N support sets (Bs, C, H, W).
    Returns (Bq, 1, N*H*W) float32, matching the PyTorch module.
    """
    N = len(x2_list)
    Bs, C, H, W = x2_list[0].shape
    assert all(s.shape == (Bs, C, H, W) for s in x2_list), (
        "all support classes must share a shape")
    # TODO(synk): ragged shot counts per class would need per-class M handling.
    M = Bs * H * W
    assert M > 1, "covariance divides by (Bs*H*W - 1)"

    # One-time layout glue: both MXU-native orientations of the support.
    support = jnp.stack(x2_list, axis=0)                        # (N,Bs,C,H,W)
    support_cm = support.transpose(0, 2, 1, 3, 4).reshape(N, C, M)
    support_mc = support.transpose(0, 1, 3, 4, 2).reshape(N, M, C)

    Bq, Cq, Hq, Wq = x1.shape
    assert Cq == C
    HW = Hq * Wq
    QL = Bq * HW

    # ---- Pass 1: per-class covariance matrices (tiny) ----
    cov = pl.pallas_call(
        _cov_kernel,
        out_shape=jax.ShapeDtypeStruct((N, C, C), jnp.float32),
        grid=(N,),
        in_specs=[
            pl.BlockSpec((1, C, M), lambda j: (j, 0, 0)),
            pl.BlockSpec((1, M, C), lambda j: (j, 0, 0)),
        ],
        out_specs=pl.BlockSpec((1, C, C), lambda j: (j, 0, 0)),
        compiler_params=pltpu.CompilerParams(
            dimension_semantics=("parallel",),
            vmem_limit_bytes=32 * 1024 * 1024),
    )(support_cm, support_mc)

    # ---- Query normalization: hoisted, once, in f32 (no per-step casts) ----
    q32 = x1.reshape(Bq, C, HW).astype(jnp.float32)
    inv = lax.rsqrt(jnp.sum(q32 * q32, axis=2, keepdims=True))  # (Bq, C, 1)
    qn = (q32 * inv).transpose(1, 0, 2).reshape(C, QL)          # (C, QL) f32

    # ---- Lane-dense padding + QL tiling ----
    tq = max(128, (min(tq, pl.cdiv(QL, 128) * 128) // 128) * 128)
    QLp = pl.cdiv(QL, tq) * tq
    if QLp != QL:
        qn = jnp.pad(qn, ((0, 0), (0, QLp - QL)))               # zero columns
    QT = QLp // tq

    # ---- Pass 2: similarity, one lane-dense query tile per grid step ----
    sim = pl.pallas_call(
        _sim_kernel,
        out_shape=jax.ShapeDtypeStruct((N, QLp), jnp.float32),
        grid=(QT,),
        in_specs=[
            pl.BlockSpec((N, C, C), lambda q: (0, 0, 0)),  # resident, tiny
            pl.BlockSpec((C, tq), lambda q: (0, q)),       # each tile DMA'd once
        ],
        out_specs=pl.BlockSpec((N, tq), lambda q: (0, q)),
        compiler_params=pltpu.CompilerParams(
            dimension_semantics=("parallel",),
            vmem_limit_bytes=32 * 1024 * 1024),
    )(cov, qn)

    # (N, QLp) -> drop padding -> (Bq, N, HW) -> (Bq, 1, N*HW), PyTorch layout.
    sim = sim[:, :QL].reshape(N, Bq, HW).transpose(1, 0, 2)
    return sim.reshape(Bq, 1, N * HW)


# ---------------- Pure-JAX reference (for verification) ----------------

def cova_block_ref(x1, x2_list):
    covs = []
    for s in x2_list:
        Bs, C, H, W = s.shape
        x = jnp.transpose(s, (1, 0, 2, 3)).reshape(C, -1)
        x = x - jnp.mean(x, axis=1, keepdims=True)
        covs.append(x @ x.T / (Bs * H * W - 1))
    Bq, C, H, W = x1.shape
    hw = H * W
    rows = []
    for i in range(Bq):
        qq = x1[i].reshape(C, hw)
        qq = qq / jnp.linalg.norm(qq, axis=1, keepdims=True)
        parts = [jnp.diag(qq.T @ cov @ qq) for cov in covs]
        rows.append(jnp.concatenate(parts))
    return jnp.stack(rows)[:, None, :]


if __name__ == "__main__":
    key = jax.random.PRNGKey(0)
    k1, k2 = jax.random.split(key)

    # Small few-shot style shapes: 3-way, 4 support samples per class.
    Bq, C, H, W = 2, 8, 4, 4      # query batch
    N, Bs = 3, 4                  # num classes (len(x2)), support per class

    x1 = jax.random.normal(k1, (Bq, C, H, W), dtype=jnp.float32)
    x2 = [
        jax.random.normal(jax.random.fold_in(k2, i), (Bs, C, H, W),
                          dtype=jnp.float32)
        for i in range(N)
    ]

    out = cova_block(x1, x2)
    out = jax.block_until_ready(out)
    assert out.shape == (Bq, 1, N * H * W), out.shape

    ref = cova_block_ref(x1, x2)
    assert jnp.allclose(out, ref, atol=1e-4, rtol=1e-4), (
        float(jnp.max(jnp.abs(out - ref))))

    print("KERNEL_OK")
</pallas_src>

<mosaic_0001>
module attributes {stable_mosaic.version = 11 : i64} {
  func.func @_cov_kernel(%arg0: i32, %arg1: memref<1x8x64xf32, #tpu.memory_space<vmem>>, %arg2: memref<1x64x8xf32, #tpu.memory_space<vmem>>, %arg3: memref<1x8x8xf32, #tpu.memory_space<vmem>>) attributes {dimension_semantics = [#tpu.dimension_semantics<parallel>], iteration_bounds = array<i64: 3>, scalar_prefetch = 0 : i64, scratch_operands = 0 : i64, tpu.core_type = #tpu.core_type<tc>, window_params = [{transform_indices = @transform_0, window_bounds = array<i64: 1, 8, 64>}, {transform_indices = @transform_1, window_bounds = array<i64: 1, 64, 8>}, {transform_indices = @transform_2, window_bounds = array<i64: 1, 8, 8>}]} {
    %c0 = arith.constant 0 : index
    %c0_0 = arith.constant 0 : index
    %c0_1 = arith.constant 0 : index
    %0 = vector.load %arg1[%c0, %c0_0, %c0_1] : memref<1x8x64xf32, #tpu.memory_space<vmem>>, vector<1x8x64xf32>
    %1 = vector.shape_cast %0 : vector<1x8x64xf32> to vector<8x64xf32>
    %c0_2 = arith.constant 0 : index
    %c0_3 = arith.constant 0 : index
    %c0_4 = arith.constant 0 : index
    %2 = vector.load %arg2[%c0_2, %c0_3, %c0_4] : memref<1x64x8xf32, #tpu.memory_space<vmem>>, vector<1x64x8xf32>
    %3 = vector.shape_cast %2 : vector<1x64x8xf32> to vector<64x8xf32>
    %cst = arith.constant dense<0.000000e+00> : vector<8xf32>
    %4 = vector.multi_reduction <add>, %1, %cst [1] : vector<8x64xf32> to vector<8xf32>
    %5 = vector.shape_cast %4 : vector<8xf32> to vector<8x1xf32>
    %cst_5 = arith.constant 6.400000e+01 : f32
    %6 = vector.broadcast %cst_5 : f32 to vector<8x1xf32>
    %7 = arith.divf %5, %6 : vector<8x1xf32>
    %cst_6 = arith.constant dense<0.000000e+00> : vector<8xf32>
    %8 = vector.multi_reduction <add>, %3, %cst_6 [0] : vector<64x8xf32> to vector<8xf32>
    %9 = vector.shape_cast %8 : vector<8xf32> to vector<1x8xf32>
    %cst_7 = arith.constant 6.400000e+01 : f32
    %10 = vector.broadcast %cst_7 : f32 to vector<1x8xf32>
    %11 = arith.divf %9, %10 : vector<1x8xf32>
    %12 = vector.broadcast %7 : vector<8x1xf32> to vector<8x64xf32>
    %13 = arith.subf %1, %12 : vector<8x64xf32>
    %14 = vector.broadcast %11 : vector<1x8xf32> to vector<64x8xf32>
    %15 = arith.subf %3, %14 : vector<64x8xf32>
    %cst_8 = arith.constant dense<0.000000e+00> : vector<8x8xf32>
    %16 = tpu.matmul %13, %15, %cst_8 {dimension_numbers = #tpu.dot_dimension_numbers<[1], [0], [0], [1], [0, 0, 1, 1], [], []>} : vector<8x64xf32>, vector<64x8xf32>, vector<8x8xf32> -> vector<8x8xf32>
    %cst_9 = arith.constant 0.0158730168 : f32
    %17 = vector.broadcast %cst_9 : f32 to vector<8x8xf32>
    %18 = arith.mulf %16, %17 : vector<8x8xf32>
    %c0_10 = arith.constant 0 : index
    %c0_11 = arith.constant 0 : index
    %c0_12 = arith.constant 0 : index
    %19 = vector.load %arg3[%c0_10, %c0_11, %c0_12] : memref<1x8x8xf32, #tpu.memory_space<vmem>>, vector<1x8x8xf32>
    %20 = vector.shape_cast %19 : vector<1x8x8xf32> to vector<8x8xf32>
    %21 = vector.shape_cast %18 : vector<8x8xf32> to vector<1x8x8xf32>
    tpu.vector_store %arg3[%c0_10, %c0_11, %c0_12], %21 {strides = array<i32>} : memref<1x8x8xf32, #tpu.memory_space<vmem>>, vector<1x8x8xf32>,
    return
  }
  func.func @transform_0(%arg0: i32) -> (i32, i32, i32) {
    %c0_i32 = arith.constant 0 : i32
    %c0_i32_0 = arith.constant 0 : i32
    %c0_i32_1 = arith.constant 0 : i32
    return %arg0, %c0_i32, %c0_i32_0 : i32, i32, i32
  }
  func.func @transform_1(%arg0: i32) -> (i32, i32, i32) {
    %c0_i32 = arith.constant 0 : i32
    %c0_i32_0 = arith.constant 0 : i32
    %c0_i32_1 = arith.constant 0 : i32
    return %arg0, %c0_i32, %c0_i32_0 : i32, i32, i32
  }
  func.func @transform_2(%arg0: i32) -> (i32, i32, i32) {
    %c0_i32 = arith.constant 0 : i32
    %c0_i32_0 = arith.constant 0 : i32
    %c0_i32_1 = arith.constant 0 : i32
    return %arg0, %c0_i32, %c0_i32_0 : i32, i32, i32
  }
}

</mosaic_0001>

<bundles_post_ra>
// kernel: tpu_custom_call.1
= control target key start
LH: loop header
LB: loop body
LE: loop exit
PB: predicated region body
PF: predicated region fallthrough
CT: control target
= control target key end

     0   :  { %7 = vsyncpa [#allocation3], 0  ;;  %s559_s0 = inlined_call_operand.vmem [shape: f32[3,8,64], index: 0, kind: input, shape index: {}]   ;;  %s560_s1 = inlined_call_operand.vmem [shape: f32[3,64,8], index: 1, kind: input, shape index: {}]   ;;  %s561_s2 = inlined_call_operand.hbm [shape: f32[3,8,8], index: 2, kind: output, shape index: {}]  }
   0x1   :  { %9 = vsyncpa [#allocation3 + $0x1], 0  ;;  %s460_s9 = smov 0   ;;  %s462_s10 = smov 0  }
   0x2   :  { %s464_s11 = smov 0   ;;  %s466_s12 = smov 0  }
   0x3 LB: > { %s481_s13 = sadd.s32 4294967295, %s442_s12   ;;  %s324_s14 = sadd.s32 4294967294, %s442_s12   ;;  %s442_s12 = sphi %s466_s12, %s567_s12   ;;  %s438_s11 = sphi %s464_s11, %s566_s11   ;;  %s434_s10 = sphi %s462_s10, %s565_s10   ;;  %s430_s9 = sphi %s460_s9, %s564_s9  }
   0x4   : > { %s485_s15 = sadd.s32 1, %s442_s12   ;;  %s74_s16 = sadd.s32 1, %s438_s11 }
   0x5   : > { %s71_s17 = ssub.s32 %s442_s12, %s485_s15  ;;  %p84_p0 = scmp.ne.s32.totalorder %s438_s11, %s434_s10 }
   0x6   : > { %p72_p1 = scmp.eq.s32.totalorder %s71_s17, 0  ;;  %p85_p2 = scmp.eq.s32.totalorder %s481_s13, 2 }
   0x7   : > { %p90_p3 = scmp.ne.s32.totalorder %s434_s10, %s430_s9  ;;  %p91_p4 = scmp.eq.s32.totalorder %s324_s14, 2 }
   0x8   : > { %s496_s18 = scalar_select %p72_p1, %s438_s11, %s74_s16  }
   0x9   : > { %p498_p5 = por %p85_p2, %p84_p0  ;;  %p502_p6 = por %p91_p4, %p90_p3 }
   0xa   : > { %p327_p7 = scmp.ge.s32.totalorder %s442_s12, 1  ;;  %p124_p8 = scmp.lt.s32.totalorder %s442_s12, 4 }
   0xc   : > { %p125_p9 = pnand %p327_p7, %p124_p8 }
   0xd   : > { %p150_p10 = scmp.lt.s32.totalorder (!%p125_p9), %s481_s13, 2  ;;  %s147_s30 = sand.u32 (!%p125_p9), 1, %s434_s10  }
   0xe   : > { %128 = sbr.rel (%p125_p9) target bundleno = 276 (0x114), region = 28  ;;  %s328_s3 = sshll.u32 (!%p125_p9), %s147_s30, 3 }
   0xf   : > { %s334_s4 = sshll.u32 (!%p125_p9), %s481_s13, 3  ;;  %s149_s8 = scalar_lea.vmem (!%p125_p9), [#allocation2], %s328_s3 }
  0x10   : > { %s248_s7 = scalar_lea.hbm (!%p125_p9), %s561_s2, %s334_s4  ;;  %s250_s14 = sshll.u32 (!%p125_p9), %s149_s8, 4  ;;  %s251_s14 = int_to_ptr.vmem [resolvable:$true] %s250_s14 }
  0x11   : > { %s252_s16 = sshll.u32 (!%p125_p9), %s248_s7, 4  ;;  %s238_s17 = scalar_lea.sflag (!%p125_p9), [#allocation3], %s147_s30  ;;  %s253_s16 = int_to_ptr.hbm [resolvable:$true] %s252_s16 }
  0x12   : > { %s400_s24 = scalar_lea.hbm (!%p125_p9), %s561_s2, 24 }
  0x13   : > { %s151_s21 = scalar_select %p150_p10, %s481_s13, 2  ;;  %vm168_vm0 = vcmask 523264   ;;  %vm180_vm1 = vcmask 64512   ;;  %v444_v3 = vmov 64.0  }
  0x14   : > { %378 = vrcp.f32 %v444_v3 }
  0x15   : > { %s329_s22 = sshll.u32 %s151_s21, 3  ;;  %s337_s23 = sshll.u32 %s151_s21, 6 }
  0x16   : > { %s153_s26 = scalar_lea.vmem %s559_s0, %s329_s22  ;;  %s158_s29 = scalar_lea.vmem %s560_s1, %s337_s23 }
  0x17   : > { %v159_v0 = vld [vmem:[%s153_s26] sm:$0xff]  ;;  %v161_v2 = vld [vmem:[%s158_s29 + $0x8] sm:$0xff]  ;;  %v162_v5 = vld [vmem:[%s158_s29 + $0x10] sm:$0xff]  ;;  %s394_s21 = sshra.s32 %s253_s16, 4  ;;  %s395_s21 = int_to_ptr.hbm [resolvable:$true] %s394_s21 }
  0x18   : > { %v160_v1 = vld [vmem:[%s158_s29] sm:$0xff]  ;;  %v169_v4 = vsel %vm168_vm0, %v159_v0, 0.0  ;;  %v163_v6 = vld [vmem:[%s158_s29 + $0x18] sm:$0xff]  ;;  %v182_v8 = vsel %vm180_vm1, %v161_v2, 0.0  ;;  %v184_v11 = vsel %vm180_vm1, %v162_v5, 0.0  ;;  %v165_v13 = vld [vmem:[%s158_s29 + $0x28] sm:$0xff]  ;;  %p401_p0 = scmp.lt.s32.totalorder %s395_s21, %s561_s2 }
  0x19   : > { %v181_v7 = vsel %vm180_vm1, %v160_v1, 0.0  ;;  %170 = vadd.xlane.f32.xlu0 %v169_v4  ;;  %v164_v9 = vld [vmem:[%s158_s29 + $0x20] sm:$0xff]  ;;  %v186_v12 = vsel %vm180_vm1, %v163_v6, 0.0  ;;  %v166_v17 = vld [vmem:[%s158_s29 + $0x30] sm:$0xff]  ;;  %v190_v19 = vsel %vm180_vm1, %v165_v13, 0.0  ;;  %v167_v20 = vld [vmem:[%s158_s29 + $0x38] sm:$0xff] }
  0x1a   : > { %v183_v10 = vadd.f32 %v182_v8, %v181_v7  ;;  %v188_v15 = vsel %vm180_vm1, %v164_v9, 0.0  ;;  %v379_v16 = vpop.eup %378  ;;  %v192_v23 = vsel %vm180_vm1, %v166_v17, 0.0  ;;  %v194_v25 = vsel %vm180_vm1, %v167_v20, 0.0  ;;  %s396_s22 = scalar_lea.hbm %s395_s21, 8 }
  0x1b   : > { %v173_v22 = vmul.f32 64.0, %v379_v16  ;;  %vm177_vm2 = vweird.f32 %v379_v16  ;;  %p397_p11 = scmp.ne.s32.totalorder %s395_s21, %s396_s22  ;;  %p402_p1 = scmp.lt.s32.totalorder %s400_s24, %s396_s22 }
  0x1c   : > { %v185_v14 = vadd.f32 %v184_v11, %v183_v10 }
  0x1d   : > { %v174_v27 = vsub.f32 1.0, %v173_v22  ;;  %p398_p12 = pnand %p397_p11, %p498_p5  ;;  %p403_p2 = por %p402_p1, %p401_p0 }
  0x1e   : > { %v187_v18 = vadd.f32 %v186_v12, %v185_v14 }
  0x1f   : > { %v175_v30 = vmul.f32 %v379_v16, %v174_v27  ;;  %p399_p13 = pneg %p398_p12 }
  0x20   : > { %v189_v21 = vadd.f32 %v188_v15, %v187_v18 }
  0x21   : > { %v176_v33 = vadd.f32 %v379_v16, %v175_v30  ;;  %p404_p3 = pnand %p403_p2, %p399_p13 }
  0x22   : > { %v191_v24 = vadd.f32 %v190_v19, %v189_v21 }
  0x23   : > { %v178_v36 = vsel %vm177_vm2, %v379_v16, %v176_v33 }
  0x24   : > { %v193_v26 = vadd.f32 %v192_v23, %v191_v24 }
  0x26   : > { %v195_v28 = vadd.f32 %v194_v25, %v193_v26 }
  0x28   : > { %v196_v29 = vrot.slane %v195_v28, 4 }
  0x2a   : > { %v197_v31 = vadd.f32 %v196_v29, %v195_v28 }
  0x2c   : > { %v198_v32 = vrot.slane %v197_v31, 2 }
  0x2e   : > { %v199_v34 = vadd.f32 %v198_v32, %v197_v31 }
  0x30   : > { %v200_v35 = vrot.slane %v199_v34, 1 }
  0x32   : > { %v201_v37 = vadd.f32 %v200_v35, %v199_v34 }
  0x34   : > { %v202_v38 = vmul.f32 %v201_v37, %v178_v36 }
  0x36   : > { %v211_v39 = vsub.f32 %v167_v20, %v202_v38  ;;  %v210_v40 = vsub.f32 %v166_v17, %v202_v38  ;;  %v209_v41 = vsub.f32 %v165_v13, %v202_v38  ;;  %v208_v42 = vsub.f32 %v164_v9, %v202_v38 }
  0x37   : > { %v207_v43 = vsub.f32 %v163_v6, %v202_v38  ;;  %v206_v44 = vsub.f32 %v162_v5, %v202_v38  ;;  %v205_v45 = vsub.f32 %v161_v2, %v202_v38  ;;  %v204_v46 = vsub.f32 %v160_v1, %v202_v38 }
  0x38   : > { %223 = vmatpush.msra.mxu0 %v211_v39 }
  0x3a   : > { %224 = vmatpush.msra.mxu0 %v210_v40 }
  0x3c   : > { %225 = vmatpush.msra.mxu0 %v209_v41 }
  0x3e   : > { %226 = vmatpush.msra.mxu0 %v208_v42 }
  0x40   : > { %227 = vmatpush.msra.mxu0 %v207_v43 }
  0x42   : > { %228 = vmatpush.msra.mxu0 %v206_v44 }
  0x44   : > { %229 = vmatpush.msra.mxu0 %v205_v45 }
  0x46   : > { %230 = vmatpush.msra.mxu0 %v204_v46 }
  0x8c   : > { %v171_v47 = vpop.xlane.xlu0 %170 }
  0x8d   : > { %v179_v48 = vmul.f32 %v178_v36, %v171_v47 }
  0x8f   : > { %v203_v49 = vsub.f32 %v159_v0, %v179_v48 }
  0x91   : > { %332 = vmatmul.msk.f32.vlgmr.msra.gmra.mxu0 %vm168_vm0, %v203_v49 }
 0x10e   : > { %v232_v50 = vpop.f32.mrf.mxu0 }
 0x10f   : > { %v235_v51 = vmul.f32 0.015873017, %v232_v50 }
 0x111   : > { %236 = vst.msk [vmem:[%s149_s8] sm:$0xff] %vm180_vm1, %v235_v51 }
 0x112   : > { %407 = shalt.err (!%p404_p3)
}
 0x113   : > { %338 = dma.vmem_to_hbm [thread:$0]  (%p498_p5), %s251_s14, 128, %s253_s16, %s238_s17  }
 0x114 PF: > { %p344_p4 = scmp.ge.s32.totalorder %s442_s12, 2  ;;  %s264_s27 = sand.u32 1, %s430_s9  }
 0x115   : > { %s265_s28 = scalar_lea.sflag [#allocation3], %s264_s27 }
 0x116   : > { %p341_p7 = pnand %p344_p4, %p502_p6 }
 0x118   : > { %p342_p8 = pneg %p341_p7 }
 0x11a   : > { %425 = dma.done.wait (%p342_p8), %s265_s28, 128  }
 0x11b   : > { %427 = vsyncadd (%p342_p8), %s265_s28, 4294967168  ;;  %p12_p9 = scmp.ge.s32.totalorder %s485_s15, 5   ;;  %s564_s9 = smov %s434_s10 }
 0x11c   : > { %s565_s10 = smov %s438_s11  ;;  %s566_s11 = smov %s496_s18 }
 0x11d   : > { %s567_s12 = smov %s485_s15  ;;  %14 = sbr.rel (!%p12_p9) target bundleno = 3 (0x3), region = 66 }
 0x122   :  { %271 = vsyncpa [#allocation3], 1 }
 0x123   :  { %273 = vsyncpa [#allocation3 + $0x1], 1 }

</bundles_post_ra>
